<compile_context>
chip_gen: v5e
topology: v5e:2x2
jax: 0.10.0
libtpu: 0.0.40
codegen_flags: <defaults>
</compile_context>

<pallas_src>
import functools

import jax
import jax.numpy as jnp
import numpy as np
from jax.experimental import pallas as pl
from jax.experimental.pallas import tpu as pltpu

LN_EPS = 1e-12   # ALBERT layer_norm_eps
PAD_IDX = 0      # ALBERT pad token id (lookup unaffected; kept for the demo inputs)


# ---------------------------------------------------------------------------
# Pallas kernel: LayerNorm(core) -> Linear(E->H) -> Linear(H->H) -> tanh -> per-seq mean
# One grid step processes a dense (nb*S, E) row slab (nb whole sequences).
# gamma/beta are folded into w1/b1 by the wrapper.
# ---------------------------------------------------------------------------
def _fused_kernel(x_ref, w1_ref, b1_ref, w2_ref, b2_ref, out_ref, *, seq_len):
    rows, _ = x_ref.shape
    H = w2_ref.shape[1]

    x = x_ref[...].astype(jnp.float32)                     # (rows, E) f32

    # Two-pass LayerNorm statistics over the hidden (lane) axis.
    mu = jnp.mean(x, axis=-1, keepdims=True)
    xc = x - mu
    var = jnp.mean(xc * xc, axis=-1, keepdims=True)
    xn = xc * jax.lax.rsqrt(var + LN_EPS)                  # affine folded into w1/b1

    # embedding_hidden_mapping_in on the MXU: bf16 operands, f32 accumulation.
    h0 = jnp.dot(xn.astype(jnp.bfloat16), w1_ref[...],
                 preferred_element_type=jnp.float32) + b1_ref[...]      # (rows, H)

    # Pooler dense + tanh.
    y = jnp.tanh(jnp.dot(h0.astype(jnp.bfloat16), w2_ref[...],
                         preferred_element_type=jnp.float32) + b2_ref[...])

    if seq_len == 1:                                       # 'cls' path: rows == nb
        out_ref[...] = y
    else:
        nb = rows // seq_len
        out_ref[...] = jnp.mean(y.reshape(nb, seq_len, H), axis=1)


# ---------------------------------------------------------------------------
# Planning: generation-aware rows-per-step / VMEM budget
# ---------------------------------------------------------------------------
def _tpu_vmem_capacity_bytes():
    try:
        return int(pltpu.get_tpu_info().vmem_capacity_bytes)
    except Exception:
        return 64 * 1024 * 1024     # conservative (v7x-sized) fallback


def _vmem_estimate(rows, nb, E, H, weight_bufs):
    inp = 2 * rows * E * 2                       # double-buffered bf16 input block
    act = rows * (E + 2 * H) * 4                 # f32 xn + two matmul results
    act += rows * (E + H) * 2                    # bf16 MXU operand copies
    wts = weight_bufs * (E * H + H * H) * 2      # bf16 weights
    out = 2 * nb * H * 4
    return inp + act + wts + out


def _plan_rows(B, S, E, H):
    """Returns (nb sequences per grid step, grid length G, vmem budget bytes)."""
    cap = _tpu_vmem_capacity_bytes()
    budget = int(0.75 * cap)                     # ~96 MiB on v5e/v6e, ~48 MiB on v7x
    rows_target = 512 if (cap > 72 * 1024 * 1024 or H < 4096) else 256

    nb = max(8, ((rows_target // max(S, 1)) // 8) * 8)   # 8-aligned sublane-dense blocks
    while nb > 8 and _vmem_estimate(nb * S, nb, E, H, 1) > budget:
        nb -= 8
    # TODO(synk): sub-sequence (S) tiling when even nb=8 overflows the budget.

    if B <= nb:
        return B, 1, budget                      # single step: blocks == full arrays
    G = -(-B // nb)                              # ceil
    if G > 1 and G % 2:
        G += 1                                   # even grid: balance v7x's 2 TensorCores
    return nb, G, budget


# ---------------------------------------------------------------------------
# pallas_call wrapper
# ---------------------------------------------------------------------------
def _fused_ln_proj_pool(x_rows, w1, b1, w2, b2, *, seq_len, nb, grid, vmem_limit):
    rows_per_step = nb * seq_len
    E = x_rows.shape[1]
    H = w2.shape[1]
    kernel = functools.partial(_fused_kernel, seq_len=seq_len)

    def build(weight_mode):
        const = {} if weight_mode is None else {"pipeline_mode": weight_mode}
        return pl.pallas_call(
            kernel,
            out_shape=jax.ShapeDtypeStruct((grid * nb, H), jnp.float32),
            grid_spec=pltpu.PrefetchScalarGridSpec(
                num_scalar_prefetch=0,
                grid=(grid,),
                in_specs=[
                    pl.BlockSpec((rows_per_step, E), lambda i: (i, 0)),   # row slab
                    pl.BlockSpec((E, H), lambda i: (0, 0), **const),      # W_map' (bf16)
                    pl.BlockSpec((1, H), lambda i: (0, 0), **const),      # b_map'
                    pl.BlockSpec((H, H), lambda i: (0, 0), **const),      # W_pool^T (bf16)
                    pl.BlockSpec((1, H), lambda i: (0, 0), **const),      # b_pool
                ],
                out_specs=pl.BlockSpec((nb, H), lambda i: (i, 0)),
            ),
            compiler_params=pltpu.CompilerParams(
                dimension_semantics=("parallel",),
                vmem_limit_bytes=vmem_limit,
            ),
        )

    try:
        # Constant-index weight blocks single-buffered: halves resident weight VMEM.
        return build(pl.Buffered(1))(x_rows, w1, b1, w2, b2)
    except Exception:
        # Fallback to default (double-buffered) pipelining if Buffered(1) is rejected.
        return build(None)(x_rows, w1, b1, w2, b2)


# ---------------------------------------------------------------------------
# Glue (plain JAX): ALBERT embedding lookups (data-dependent gather stays in XLA)
# ---------------------------------------------------------------------------
def albert_embedding_sum(input_ids, word_emb, pos_emb, type_emb, token_type_ids=None):
    S = input_ids.shape[1]
    we = word_emb[input_ids]                        # (B, S, E)
    pe = pos_emb[:S][None, :, :]                    # ALBERT position ids = arange(S)
    if token_type_ids is None:
        te = type_emb[0][None, None, :]             # token_type_id = 0
    else:
        te = type_emb[token_type_ids]
    return we + pe + te


def prepare_sentence_albert_params(raw):
    """One-time weight prep: transpose, bf16 cast, LN-affine fold into W_map."""
    E = raw["word_emb"].shape[1]
    H = raw["pooler_w"].shape[0]
    gamma = raw["ln_gamma"].astype(jnp.float32)
    beta = raw["ln_beta"].astype(jnp.float32)
    w1_t = raw["map_in_w"].astype(jnp.float32).T                    # (E, H)
    # (xn*g + b) @ W^T  ==  xn @ (g[:,None]*W^T)  +  b @ W^T
    w1p = (gamma[:, None] * w1_t).astype(jnp.bfloat16)
    b1p = (beta @ w1_t + raw["map_in_b"].astype(jnp.float32)).reshape(1, H)
    return {
        "word_emb": raw["word_emb"].astype(jnp.float32),
        "pos_emb": raw["pos_emb"].astype(jnp.float32),
        "type_emb": raw["type_emb"].astype(jnp.float32),
        "w1p": w1p,
        "b1p": b1p.astype(jnp.float32),
        "w2t": raw["pooler_w"].astype(jnp.float32).T.astype(jnp.bfloat16),   # (H, H)
        "b2": raw["pooler_b"].reshape(1, H).astype(jnp.float32),
    }


def sentence_albert_forward(prepared, input_ids, attention_mask=None,
                            token_type_ids=None, pooling_mode="mean"):
    if pooling_mode not in ("mean", "cls"):
        raise ValueError(f"Invalid pooling mode: {pooling_mode}")
    del attention_mask  # never influences hidden_states[0] nor the module's pooling

    ids, tt = input_ids, token_type_ids
    if pooling_mode == "cls":
        ids = ids[:, :1]                            # only token 0 is ever consumed
        tt = None if tt is None else tt[:, :1]

    # TODO(synk): fuse this gather into the kernel (scalar-prefetched ids + DMA row
    #             gather) to drop the (B,S,E) HBM slab round trip.
    x = albert_embedding_sum(ids, prepared["word_emb"], prepared["pos_emb"],
                             prepared["type_emb"], tt)
    B, S, E = x.shape
    H = prepared["w2t"].shape[1]

    nb, G, budget = _plan_rows(B, S, E, H)
    x_rows = x.reshape(B * S, E).astype(jnp.bfloat16)        # lane/sublane-dense 2-D slab
    pad = G * nb * S - B * S
    if pad:
        # Zero pad rows: LN of zeros stays finite (eps>0); padded outputs are sliced off.
        x_rows = jnp.pad(x_rows, ((0, pad), (0, 0)))

    out = _fused_ln_proj_pool(x_rows, prepared["w1p"], prepared["b1p"],
                              prepared["w2t"], prepared["b2"],
                              seq_len=S, nb=nb, grid=G, vmem_limit=budget)
    return out[:B]


# ---------------------------------------------------------------------------
# Pure-JAX f32 reference (structured like the PyTorch model)
# ---------------------------------------------------------------------------
def _reference(params, input_ids, token_type_ids, pooling_mode):
    x = albert_embedding_sum(input_ids, params["word_emb"], params["pos_emb"],
                             params["type_emb"], token_type_ids)
    mu = jnp.mean(x, axis=-1, keepdims=True)
    var = jnp.mean((x - mu) ** 2, axis=-1, keepdims=True)
    xn = (x - mu) / jnp.sqrt(var + LN_EPS)
    xn = xn * params["ln_gamma"] + params["ln_beta"]
    h0 = jnp.einsum("bse,he->bsh", xn, params["map_in_w"]) + params["map_in_b"]
    y = jnp.tanh(jnp.einsum("bsh,oh->bso", h0, params["pooler_w"]) + params["pooler_b"])
    return y.mean(axis=1) if pooling_mode == "mean" else y[:, 0, :]


if __name__ == "__main__":
    # Small synthetic ALBERT-ish config (embedding_size != hidden_size).
    B, S = 4, 8
    E, H = 32, 64
    VOCAB, MAX_POS, N_TYPES = 100, 64, 2

    key = jax.random.PRNGKey(0)
    ks = jax.random.split(key, 11)
    params = {
        "word_emb": 0.02 * jax.random.normal(ks[0], (VOCAB, E), jnp.float32),
        "pos_emb": 0.02 * jax.random.normal(ks[1], (MAX_POS, E), jnp.float32),
        "type_emb": 0.02 * jax.random.normal(ks[2], (N_TYPES, E), jnp.float32),
        "ln_gamma": jnp.ones((E,), jnp.float32)
        + 0.1 * jax.random.normal(ks[3], (E,), jnp.float32),
        "ln_beta": 0.1 * jax.random.normal(ks[4], (E,), jnp.float32),
        "map_in_w": jax.random.normal(ks[5], (H, E), jnp.float32) / jnp.sqrt(E),
        "map_in_b": 0.1 * jax.random.normal(ks[6], (H,), jnp.float32),
        "pooler_w": jax.random.normal(ks[7], (H, H), jnp.float32) / jnp.sqrt(H),
        "pooler_b": 0.1 * jax.random.normal(ks[8], (H,), jnp.float32),
    }
    prepared = prepare_sentence_albert_params(params)

    input_ids = jax.random.randint(ks[9], (B, S), 4, VOCAB, dtype=jnp.int32)
    input_ids = input_ids.at[:, 0].set(2)               # [CLS]-like token at position 0
    input_ids = input_ids.at[-1, -2:].set(PAD_IDX)
    attention_mask = (input_ids != PAD_IDX).astype(jnp.int32)

    # Tolerance covers the bf16 MXU operand quantization vs. the f32 reference.
    out_mean = jax.block_until_ready(
        sentence_albert_forward(prepared, input_ids, attention_mask, None, "mean"))
    ref_mean = _reference(params, input_ids, None, "mean")
    np.testing.assert_allclose(np.asarray(out_mean), np.asarray(ref_mean),
                               rtol=4e-2, atol=4e-2)

    out_cls = jax.block_until_ready(
        sentence_albert_forward(prepared, input_ids, attention_mask, None, "cls"))
    ref_cls = _reference(params, input_ids, None, "cls")
    np.testing.assert_allclose(np.asarray(out_cls), np.asarray(ref_cls),
                               rtol=4e-2, atol=4e-2)

    # Larger, awkward batch: exercises the multi-step grid + row-padding path.
    B2 = 70
    input_ids2 = jax.random.randint(ks[10], (B2, S), 4, VOCAB, dtype=jnp.int32)
    input_ids2 = input_ids2.at[:, 0].set(2)
    out_mean2 = jax.block_until_ready(
        sentence_albert_forward(prepared, input_ids2, None, None, "mean"))
    ref_mean2 = _reference(params, input_ids2, None, "mean")
    np.testing.assert_allclose(np.asarray(out_mean2), np.asarray(ref_mean2),
                               rtol=4e-2, atol=4e-2)

    print("KERNEL_OK")
</pallas_src>

<mosaic_0001>
module attributes {stable_mosaic.version = 11 : i64} {
  func.func @_fused_kernel(%arg0: i32, %arg1: memref<32x32xbf16, #tpu.memory_space<vmem>>, %arg2: memref<32x64xbf16, #tpu.memory_space<vmem>>, %arg3: memref<1x64xf32, #tpu.memory_space<vmem>>, %arg4: memref<64x64xbf16, #tpu.memory_space<vmem>>, %arg5: memref<1x64xf32, #tpu.memory_space<vmem>>, %arg6: memref<4x64xf32, #tpu.memory_space<vmem>>) attributes {dimension_semantics = [#tpu.dimension_semantics<parallel>], iteration_bounds = array<i64: 1>, scalar_prefetch = 0 : i64, scratch_operands = 0 : i64, tpu.core_type = #tpu.core_type<tc>, window_params = [{transform_indices = @transform_0, window_bounds = array<i64: 32, 32>}, {pipeline_mode = #tpu.pipeline_mode<synchronous>, transform_indices = @transform_1, window_bounds = array<i64: 32, 64>}, {pipeline_mode = #tpu.pipeline_mode<synchronous>, transform_indices = @transform_2, window_bounds = array<i64: 1, 64>}, {pipeline_mode = #tpu.pipeline_mode<synchronous>, transform_indices = @transform_3, window_bounds = array<i64: 64, 64>}, {pipeline_mode = #tpu.pipeline_mode<synchronous>, transform_indices = @transform_4, window_bounds = array<i64: 1, 64>}, {transform_indices = @transform_5, window_bounds = array<i64: 4, 64>}]} {
    %c0 = arith.constant 0 : index
    %c0_0 = arith.constant 0 : index
    %0 = vector.load %arg1[%c0, %c0_0] : memref<32x32xbf16, #tpu.memory_space<vmem>>, vector<32x32xbf16>
    %1 = arith.extf %0 : vector<32x32xbf16> to vector<32x32xf32>
    %cst = arith.constant dense<0.000000e+00> : vector<32xf32>
    %2 = vector.multi_reduction <add>, %1, %cst [1] : vector<32x32xf32> to vector<32xf32>
    %3 = vector.shape_cast %2 : vector<32xf32> to vector<32x1xf32>
    %cst_1 = arith.constant 3.200000e+01 : f32
    %4 = vector.broadcast %cst_1 : f32 to vector<32x1xf32>
    %5 = arith.divf %3, %4 : vector<32x1xf32>
    %6 = vector.broadcast %5 : vector<32x1xf32> to vector<32x32xf32>
    %7 = arith.subf %1, %6 : vector<32x32xf32>
    %8 = arith.mulf %7, %7 : vector<32x32xf32>
    %cst_2 = arith.constant dense<0.000000e+00> : vector<32xf32>
    %9 = vector.multi_reduction <add>, %8, %cst_2 [1] : vector<32x32xf32> to vector<32xf32>
    %10 = vector.shape_cast %9 : vector<32xf32> to vector<32x1xf32>
    %cst_3 = arith.constant 3.200000e+01 : f32
    %11 = vector.broadcast %cst_3 : f32 to vector<32x1xf32>
    %12 = arith.divf %10, %11 : vector<32x1xf32>
    %cst_4 = arith.constant 9.99999996E-13 : f32
    %13 = vector.broadcast %cst_4 : f32 to vector<32x1xf32>
    %14 = arith.addf %12, %13 : vector<32x1xf32>
    %15 = math.rsqrt %14 : vector<32x1xf32>
    %16 = vector.broadcast %15 : vector<32x1xf32> to vector<32x32xf32>
    %17 = arith.mulf %7, %16 : vector<32x32xf32>
    %18 = arith.truncf %17 : vector<32x32xf32> to vector<32x32xbf16>
    %c0_5 = arith.constant 0 : index
    %c0_6 = arith.constant 0 : index
    %19 = vector.load %arg2[%c0_5, %c0_6] : memref<32x64xbf16, #tpu.memory_space<vmem>>, vector<32x64xbf16>
    %cst_7 = arith.constant dense<0.000000e+00> : vector<32x64xf32>
    %20 = tpu.matmul %18, %19, %cst_7 {dimension_numbers = #tpu.dot_dimension_numbers<[1], [0], [0], [1], [0, 0, 1, 1], [], []>} : vector<32x32xbf16>, vector<32x64xbf16>, vector<32x64xf32> -> vector<32x64xf32>
    %c0_8 = arith.constant 0 : index
    %c0_9 = arith.constant 0 : index
    %21 = vector.load %arg3[%c0_8, %c0_9] : memref<1x64xf32, #tpu.memory_space<vmem>>, vector<1x64xf32>
    %22 = vector.broadcast %21 : vector<1x64xf32> to vector<32x64xf32>
    %23 = arith.addf %20, %22 : vector<32x64xf32>
    %24 = arith.truncf %23 : vector<32x64xf32> to vector<32x64xbf16>
    %c0_10 = arith.constant 0 : index
    %c0_11 = arith.constant 0 : index
    %25 = vector.load %arg4[%c0_10, %c0_11] : memref<64x64xbf16, #tpu.memory_space<vmem>>, vector<64x64xbf16>
    %cst_12 = arith.constant dense<0.000000e+00> : vector<32x64xf32>
    %26 = tpu.matmul %24, %25, %cst_12 {dimension_numbers = #tpu.dot_dimension_numbers<[1], [0], [0], [1], [0, 0, 1, 1], [], []>} : vector<32x64xbf16>, vector<64x64xbf16>, vector<32x64xf32> -> vector<32x64xf32>
    %c0_13 = arith.constant 0 : index
    %c0_14 = arith.constant 0 : index
    %27 = vector.load %arg5[%c0_13, %c0_14] : memref<1x64xf32, #tpu.memory_space<vmem>>, vector<1x64xf32>
    %28 = vector.broadcast %27 : vector<1x64xf32> to vector<32x64xf32>
    %29 = arith.addf %26, %28 : vector<32x64xf32>
    %30 = math.tanh %29 : vector<32x64xf32>
    %31 = vector.shape_cast %30 : vector<32x64xf32> to vector<4x8x64xf32>
    %cst_15 = arith.constant dense<0.000000e+00> : vector<4x64xf32>
    %32 = vector.multi_reduction <add>, %31, %cst_15 [1] : vector<4x8x64xf32> to vector<4x64xf32>
    %cst_16 = arith.constant 8.000000e+00 : f32
    %33 = vector.broadcast %cst_16 : f32 to vector<4x64xf32>
    %34 = arith.divf %32, %33 : vector<4x64xf32>
    %c0_17 = arith.constant 0 : index
    %c0_18 = arith.constant 0 : index
    %35 = vector.load %arg6[%c0_17, %c0_18] : memref<4x64xf32, #tpu.memory_space<vmem>>, vector<4x64xf32>
    tpu.vector_store %arg6[%c0_17, %c0_18], %34 {strides = array<i32>} : memref<4x64xf32, #tpu.memory_space<vmem>>, vector<4x64xf32>,
    return
  }
  func.func @transform_0(%arg0: i32) -> (i32, i32) {
    %c0_i32 = arith.constant 0 : i32
    %c0_i32_0 = arith.constant 0 : i32
    return %arg0, %c0_i32 : i32, i32
  }
  func.func @transform_1(%arg0: i32) -> (i32, i32) {
    %c0_i32 = arith.constant 0 : i32
    %c0_i32_0 = arith.constant 0 : i32
    %c0_i32_1 = arith.constant 0 : i32
    return %c0_i32, %c0_i32_0 : i32, i32
  }
  func.func @transform_2(%arg0: i32) -> (i32, i32) {
    %c0_i32 = arith.constant 0 : i32
    %c0_i32_0 = arith.constant 0 : i32
    %c0_i32_1 = arith.constant 0 : i32
    return %c0_i32, %c0_i32_0 : i32, i32
  }
  func.func @transform_3(%arg0: i32) -> (i32, i32) {
    %c0_i32 = arith.constant 0 : i32
    %c0_i32_0 = arith.constant 0 : i32
    %c0_i32_1 = arith.constant 0 : i32
    return %c0_i32, %c0_i32_0 : i32, i32
  }
  func.func @transform_4(%arg0: i32) -> (i32, i32) {
    %c0_i32 = arith.constant 0 : i32
    %c0_i32_0 = arith.constant 0 : i32
    %c0_i32_1 = arith.constant 0 : i32
    return %c0_i32, %c0_i32_0 : i32, i32
  }
  func.func @transform_5(%arg0: i32) -> (i32, i32) {
    %c0_i32 = arith.constant 0 : i32
    %c0_i32_0 = arith.constant 0 : i32
    return %arg0, %c0_i32 : i32, i32
  }
}

module attributes {stable_mosaic.version = 11 : i64} {
  func.func @_fused_kernel(%arg0: i32, %arg1: memref<32x32xbf16, #tpu.memory_space<vmem>>, %arg2: memref<32x64xbf16, #tpu.memory_space<vmem>>, %arg3: memref<1x64xf32, #tpu.memory_space<vmem>>, %arg4: memref<64x64xbf16, #tpu.memory_space<vmem>>, %arg5: memref<1x64xf32, #tpu.memory_space<vmem>>, %arg6: memref<4x64xf32, #tpu.memory_space<vmem>>) attributes {dimension_semantics = [#tpu.dimension_semantics<parallel>], iteration_bounds = array<i64: 1>, scalar_prefetch = 0 : i64, scratch_operands = 0 : i64, tpu.core_type = #tpu.core_type<tc>, window_params = [{transform_indices = @transform_0, window_bounds = array<i64: 32, 32>}, {pipeline_mode = #tpu.pipeline_mode<synchronous>, transform_indices = @transform_1, window_bounds = array<i64: 32, 64>}, {pipeline_mode = #tpu.pipeline_mode<synchronous>, transform_indices = @transform_2, window_bounds = array<i64: 1, 64>}, {pipeline_mode = #tpu.pipeline_mode<synchronous>, transform_indices = @transform_3, window_bounds = array<i64: 64, 64>}, {pipeline_mode = #tpu.pipeline_mode<synchronous>, transform_indices = @transform_4, window_bounds = array<i64: 1, 64>}, {transform_indices = @transform_5, window_bounds = array<i64: 4, 64>}]} {
    %c0 = arith.constant 0 : index
    %c0_0 = arith.constant 0 : index
    %0 = vector.load %arg1[%c0, %c0_0] : memref<32x32xbf16, #tpu.memory_space<vmem>>, vector<32x32xbf16>
    %1 = arith.extf %0 : vector<32x32xbf16> to vector<32x32xf32>
    %cst = arith.constant dense<0.000000e+00> : vector<32xf32>
    %2 = vector.multi_reduction <add>, %1, %cst [1] : vector<32x32xf32> to vector<32xf32>
    %3 = vector.shape_cast %2 : vector<32xf32> to vector<32x1xf32>
    %cst_1 = arith.constant 3.200000e+01 : f32
    %4 = vector.broadcast %cst_1 : f32 to vector<32x1xf32>
    %5 = arith.divf %3, %4 : vector<32x1xf32>
    %6 = vector.broadcast %5 : vector<32x1xf32> to vector<32x32xf32>
    %7 = arith.subf %1, %6 : vector<32x32xf32>
    %8 = arith.mulf %7, %7 : vector<32x32xf32>
    %cst_2 = arith.constant dense<0.000000e+00> : vector<32xf32>
    %9 = vector.multi_reduction <add>, %8, %cst_2 [1] : vector<32x32xf32> to vector<32xf32>
    %10 = vector.shape_cast %9 : vector<32xf32> to vector<32x1xf32>
    %cst_3 = arith.constant 3.200000e+01 : f32
    %11 = vector.broadcast %cst_3 : f32 to vector<32x1xf32>
    %12 = arith.divf %10, %11 : vector<32x1xf32>
    %cst_4 = arith.constant 9.99999996E-13 : f32
    %13 = vector.broadcast %cst_4 : f32 to vector<32x1xf32>
    %14 = arith.addf %12, %13 : vector<32x1xf32>
    %15 = math.rsqrt %14 : vector<32x1xf32>
    %16 = vector.broadcast %15 : vector<32x1xf32> to vector<32x32xf32>
    %17 = arith.mulf %7, %16 : vector<32x32xf32>
    %18 = arith.truncf %17 : vector<32x32xf32> to vector<32x32xbf16>
    %c0_5 = arith.constant 0 : index
    %c0_6 = arith.constant 0 : index
    %19 = vector.load %arg2[%c0_5, %c0_6] : memref<32x64xbf16, #tpu.memory_space<vmem>>, vector<32x64xbf16>
    %cst_7 = arith.constant dense<0.000000e+00> : vector<32x64xf32>
    %20 = tpu.matmul %18, %19, %cst_7 {dimension_numbers = #tpu.dot_dimension_numbers<[1], [0], [0], [1], [0, 0, 1, 1], [], []>} : vector<32x32xbf16>, vector<32x64xbf16>, vector<32x64xf32> -> vector<32x64xf32>
    %c0_8 = arith.constant 0 : index
    %c0_9 = arith.constant 0 : index
    %21 = vector.load %arg3[%c0_8, %c0_9] : memref<1x64xf32, #tpu.memory_space<vmem>>, vector<1x64xf32>
    %22 = vector.broadcast %21 : vector<1x64xf32> to vector<32x64xf32>
    %23 = arith.addf %20, %22 : vector<32x64xf32>
    %24 = arith.truncf %23 : vector<32x64xf32> to vector<32x64xbf16>
    %c0_10 = arith.constant 0 : index
    %c0_11 = arith.constant 0 : index
    %25 = vector.load %arg4[%c0_10, %c0_11] : memref<64x64xbf16, #tpu.memory_space<vmem>>, vector<64x64xbf16>
    %cst_12 = arith.constant dense<0.000000e+00> : vector<32x64xf32>
    %26 = tpu.matmul %24, %25, %cst_12 {dimension_numbers = #tpu.dot_dimension_numbers<[1], [0], [0], [1], [0, 0, 1, 1], [], []>} : vector<32x64xbf16>, vector<64x64xbf16>, vector<32x64xf32> -> vector<32x64xf32>
    %c0_13 = arith.constant 0 : index
    %c0_14 = arith.constant 0 : index
    %27 = vector.load %arg5[%c0_13, %c0_14] : memref<1x64xf32, #tpu.memory_space<vmem>>, vector<1x64xf32>
    %28 = vector.broadcast %27 : vector<1x64xf32> to vector<32x64xf32>
    %29 = arith.addf %26, %28 : vector<32x64xf32>
    %30 = math.tanh %29 : vector<32x64xf32>
    %31 = vector.shape_cast %30 : vector<32x64xf32> to vector<4x8x64xf32>
    %cst_15 = arith.constant dense<0.000000e+00> : vector<4x64xf32>
    %32 = vector.multi_reduction <add>, %31, %cst_15 [1] : vector<4x8x64xf32> to vector<4x64xf32>
    %cst_16 = arith.constant 8.000000e+00 : f32
    %33 = vector.broadcast %cst_16 : f32 to vector<4x64xf32>
    %34 = arith.divf %32, %33 : vector<4x64xf32>
    %c0_17 = arith.constant 0 : index
    %c0_18 = arith.constant 0 : index
    %35 = vector.load %arg6[%c0_17, %c0_18] : memref<4x64xf32, #tpu.memory_space<vmem>>, vector<4x64xf32>
    tpu.vector_store %arg6[%c0_17, %c0_18], %34 {strides = array<i32>} : memref<4x64xf32, #tpu.memory_space<vmem>>, vector<4x64xf32>,
    return
  }
  func.func @transform_0(%arg0: i32) -> (i32, i32) {
    %c0_i32 = arith.constant 0 : i32
    %c0_i32_0 = arith.constant 0 : i32
    return %arg0, %c0_i32 : i32, i32
  }
  func.func @transform_1(%arg0: i32) -> (i32, i32) {
    %c0_i32 = arith.constant 0 : i32
    %c0_i32_0 = arith.constant 0 : i32
    %c0_i32_1 = arith.constant 0 : i32
    return %c0_i32, %c0_i32_0 : i32, i32
  }
  func.func @transform_2(%arg0: i32) -> (i32, i32) {
    %c0_i32 = arith.constant 0 : i32
    %c0_i32_0 = arith.constant 0 : i32
    %c0_i32_1 = arith.constant 0 : i32
    return %c0_i32, %c0_i32_0 : i32, i32
  }
  func.func @transform_3(%arg0: i32) -> (i32, i32) {
    %c0_i32 = arith.constant 0 : i32
    %c0_i32_0 = arith.constant 0 : i32
    %c0_i32_1 = arith.constant 0 : i32
    return %c0_i32, %c0_i32_0 : i32, i32
  }
  func.func @transform_4(%arg0: i32) -> (i32, i32) {
    %c0_i32 = arith.constant 0 : i32
    %c0_i32_0 = arith.constant 0 : i32
    %c0_i32_1 = arith.constant 0 : i32
    return %c0_i32, %c0_i32_0 : i32, i32
  }
  func.func @transform_5(%arg0: i32) -> (i32, i32) {
    %c0_i32 = arith.constant 0 : i32
    %c0_i32_0 = arith.constant 0 : i32
    return %arg0, %c0_i32 : i32, i32
  }
}

</mosaic_0001>

<bundles_post_ra>
// kernel: tpu_custom_call.1
= control target key start
LH: loop header
LB: loop body
LE: loop exit
PB: predicated region body
PF: predicated region fallthrough
CT: control target
= control target key end

     0   :  { %10 = vsyncpa [#allocation3], 0  ;;  %s631_s0 = inlined_call_operand.hbm [shape: bf16[32,32], index: 0, kind: input, shape index: {}]   ;;  %s632_s1 = inlined_call_operand.hbm [shape: bf16[32,64], index: 1, kind: input, shape index: {}]   ;;  %s633_s2 = inlined_call_operand.vmem [shape: f32[1,64], index: 2, kind: input, shape index: {}]   ;;  %s634_s3 = inlined_call_operand.hbm [shape: bf16[64,64], index: 3, kind: input, shape index: {}]   ;;  %s635_s4 = inlined_call_operand.vmem [shape: f32[1,64], index: 4, kind: input, shape index: {}]   ;;  %s636_s5 = inlined_call_operand.hbm [shape: f32[4,64], index: 5, kind: output, shape index: {}]  }
   0x1   :  { %11 = vsyncpa [#allocation6], 0 }
   0x2   :  { %12 = vsyncpa [#allocation4], 0  ;;  %s30_s20 = sshll.u32 %s632_s1, 4  ;;  %s539_s21 = smov [#allocation5]   ;;  %s31_s20 = int_to_ptr.hbm [resolvable:$true] %s30_s20 }
   0x3   :  { %s32_s22 = sshll.u32 %s539_s21, 4  ;;  %s17_s25 = sshll.u32 %s631_s0, 4  ;;  %s33_s22 = int_to_ptr.vmem [resolvable:$true] %s32_s22  ;;  %s18_s25 = int_to_ptr.hbm [resolvable:$true] %s17_s25 }
   0x4   :  { %s540_s26 = smov 64   ;;  %s541_s27 = smov 4  }
   0x5   :  { %38 = dma.hbm_to_vmem [thread:$0]  %s31_s20, 256, %s33_s22, [#allocation6], %s540_s26, %s540_s26, %s541_s27  }
   0x6   :  { %s542_s28 = smov [#allocation2]   ;;  %s45_s7 = sshll.u32 %s634_s3, 4  ;;  %s46_s7 = int_to_ptr.hbm [resolvable:$true] %s45_s7 }
   0x7   :  { %s19_s29 = sshll.u32 %s542_s28, 4  ;;  %s543_s1 = smov [#allocation7]   ;;  %s20_s29 = int_to_ptr.vmem [resolvable:$true] %s19_s29 }
   0x8   :  { %25 = dma.hbm_to_vmem [thread:$0]  %s18_s25, 256, %s20_s29, [#allocation3], %s540_s26, %s540_s26, %s541_s27  }
   0x9   :  { %s47_s8 = sshll.u32 %s543_s1, 4  ;;  %s48_s8 = int_to_ptr.vmem [resolvable:$true] %s47_s8 }
   0xa   :  { %53 = dma.hbm_to_vmem [thread:$0]  %s46_s7, 512, %s48_s8, [#allocation6], %s540_s26, %s540_s26, %s541_s27  }
   0xb   :  { %533 = dma.done.wait [#allocation3], 256  }
   0xc   :  { %534 = vsyncadd [#allocation3], 4294967040 }
   0xd   :  { %535 = dma.done.wait [#allocation6], 768  }
   0xe   :  { %536 = vsyncadd [#allocation6], 4294966528  ;;  %v400_v0 = vld [vmem:[#allocation2 + $0x8] sm:$0xff]   ;;  %vm77_vm0 = vcmask 261120   ;;  %v393_v1 = vld [vmem:[#allocation2] sm:$0xff]   ;;  %v544_v10 = vmov 32.0  }
   0xf   :  { %v398_v2 = vunpack.c.l.bf16 %v400_v0  ;;  %v394_v3 = vunpack.c.l.bf16 %v393_v1  ;;  %v399_v6 = vunpack.c.h.bf16 %v400_v0  ;;  %v395_v7 = vunpack.c.h.bf16 %v393_v1  ;;  %v387_v37 = vld [vmem:[#allocation5 + $0x8] sm:$0xff]  ;;  %v386_v38 = vld [vmem:[#allocation5] sm:$0xff]  ;;  %s347_s13 = sshll.u32 %s636_s5, 4  ;;  %s348_s13 = int_to_ptr.hbm [resolvable:$true] %s347_s13 }
  0x10   :  { %417 = vrcp.f32 %v544_v10  ;;  %207 = vmatpush.bf16.msra.mxu0 %v387_v37  ;;  %401 = vmatpush.bf16.msra.mxu3 %v387_v37  ;;  %v391_v45 = vld [vmem:[#allocation7 + $0x18] sm:$0xff]  ;;  %vm258_vm14 = vcmask 523264  }
  0x11   :  { %v84_v4 = vsel %vm77_vm0, %v398_v2, 0.0  ;;  %v78_v5 = vsel %vm77_vm0, %v394_v3, 0.0  ;;  %v87_v8 = vsel %vm77_vm0, %v399_v6, 0.0  ;;  %v81_v9 = vsel %vm77_vm0, %v395_v7, 0.0  ;;  %269 = vmatpush.bf16.msra.mxu1 %v391_v45  ;;  %403 = vmatpush.bf16.msra.mxu2 %v391_v45 }
  0x12   :  { %85 = vadd.xlane.f32.xlu0 %v84_v4  ;;  %79 = vadd.xlane.f32.xlu1 %v78_v5 }
  0x14   :  { %208 = vmatpush.bf16.msra.mxu0 %v386_v38  ;;  %402 = vmatpush.bf16.msra.mxu3 %v386_v38 }
  0x16   :  { %v418_v11 = vpop.eup %417 }
  0x17   :  { %v91_v12 = vmul.f32 32.0, %v418_v11  ;;  %vm95_vm1 = vweird.f32 %v418_v11 }
  0x19   :  { %v92_v13 = vsub.f32 1.0, %v91_v12 }
  0x1a   :  { %88 = vadd.xlane.f32.xlu0 %v87_v8  ;;  %82 = vadd.xlane.f32.xlu1 %v81_v9 }
  0x1b   :  { %v93_v14 = vmul.f32 %v418_v11, %v92_v13 }
  0x1d   :  { %v94_v15 = vadd.f32 %v418_v11, %v93_v14 }
  0x1f   :  { %v96_v16 = vsel %vm95_vm1, %v418_v11, %v94_v15  ;;  %vm333_vm1 = vcmask 1042434  }
  0x85   :  { %v86_v17 = vpop.xlane.xlu0 %85  ;;  %v80_v18 = vpop.xlane.xlu1 %79 }
  0x86   :  { %v99_v19 = vmul.f32 %v96_v16, %v86_v17  ;;  %v97_v20 = vmul.f32 %v96_v16, %v80_v18 }
  0x88   :  { %v590_v21 = vsub.f32 %v398_v2, %v99_v19  ;;  %v592_v22 = vsub.f32 %v394_v3, %v97_v20 }
  0x8a   :  { %v107_v23 = vmul.f32 %v590_v21, %v590_v21  ;;  %v105_v24 = vmul.f32 %v592_v22, %v592_v22 }
  0x8c   :  { %v115_v25 = vsel %vm77_vm0, %v107_v23, 0.0  ;;  %v109_v26 = vsel %vm77_vm0, %v105_v24, 0.0  ;;  %v390_v24 = vld [vmem:[#allocation7 + $0x10] sm:$0xff] }
  0x8d   :  { %116 = vadd.xlane.f32.xlu2 %v115_v25  ;;  %v89_v27 = vpop.xlane.xlu0 %88  ;;  %110 = vadd.xlane.f32.xlu0 %v109_v26  ;;  %v83_v28 = vpop.xlane.xlu1 %82  ;;  %v389_v25 = vld [vmem:[#allocation7 + $0x8] sm:$0xff]  ;;  %v388_v26 = vld [vmem:[#allocation7] sm:$0xff] }
  0x8e   :  { %v100_v29 = vmul.f32 %v96_v16, %v89_v27  ;;  %v98_v30 = vmul.f32 %v96_v16, %v83_v28  ;;  %270 = vmatpush.bf16.msra.mxu1 %v390_v24  ;;  %404 = vmatpush.bf16.msra.mxu2 %v390_v24 }
  0x90   :  { %v600_v31 = vsub.f32 %v399_v6, %v100_v29  ;;  %v602_v32 = vsub.f32 %v395_v7, %v98_v30 }
  0x92   :  { %v108_v33 = vmul.f32 %v600_v31, %v600_v31  ;;  %v106_v34 = vmul.f32 %v602_v32, %v602_v32  ;;  %271 = vmatpush.bf16.msra.mxu1 %v389_v25  ;;  %405 = vmatpush.bf16.msra.mxu2 %v389_v25 }
  0x94   :  { %v118_v35 = vsel %vm77_vm0, %v108_v33, 0.0  ;;  %v112_v36 = vsel %vm77_vm0, %v106_v34, 0.0 }
  0x95   :  { %119 = vadd.xlane.f32.xlu2 %v118_v35  ;;  %113 = vadd.xlane.f32.xlu1 %v112_v36  ;;  %v416_v36 = vld [vmem:[%s635_s4] ss:$0 sm:$0xff] }
  0x96   :  { %272 = vmatpush.bf16.msra.mxu1 %v388_v26  ;;  %406 = vmatpush.bf16.msra.mxu2 %v388_v26 }
 0x100   :  { %v117_v39 = vpop.xlane.xlu2 %116  ;;  %v111_v40 = vpop.xlane.xlu0 %110 }
 0x101   :  { %v123_v41 = vmul.f32 %v117_v39, %v96_v16  ;;  %v121_v42 = vmul.f32 %v111_v40, %v96_v16 }
 0x103   :  { %v127_v43 = vadd.f32 1e-12, %v123_v41  ;;  %v125_v44 = vadd.f32 1e-12, %v121_v42 }
 0x105   :  { %419 = vrsqrt.f32 %v127_v43  ;;  %vm135_vm3 = vweird.f32 %v125_v44  ;;  %vm155_vm5 = vweird.f32 %v127_v43 }
 0x106   :  { %421 = vrsqrt.f32 %v125_v44 }
 0x108   :  { %v120_v46 = vpop.xlane.xlu2 %119  ;;  %v114_v47 = vpop.xlane.xlu1 %113 }
 0x109   :  { %v124_v48 = vmul.f32 %v120_v46, %v96_v16  ;;  %v122_v49 = vmul.f32 %v114_v47, %v96_v16 }
 0x10b   :  { %v420_v50 = vpop.eup %419  ;;  %v128_v51 = vadd.f32 1e-12, %v124_v48  ;;  %v126_v52 = vadd.f32 1e-12, %v122_v49 }
 0x10c   :  { %v422_v53 = vpop.eup %421  ;;  %v150_v54 = vmul.f32 %v420_v50, %v127_v43  ;;  %vm156_vm2 = vweird.f32 %v420_v50 }
 0x10d   :  { %v130_v55 = vmul.f32 %v422_v53, %v125_v44  ;;  %423 = vrsqrt.f32 %v128_v51  ;;  %vm136_vm4 = vweird.f32 %v422_v53  ;;  %vm157_vm7 = vmor %vm155_vm5, %vm156_vm2  ;;  %vm145_vm8 = vweird.f32 %v126_v52 }
 0x10e   :  { %v151_v56 = vmul.f32 %v420_v50, %v150_v54  ;;  %425 = vrsqrt.f32 %v126_v52  ;;  %vm137_vm10 = vmor %vm135_vm3, %vm136_vm4  ;;  %vm165_vm11 = vweird.f32 %v128_v51  ;;  %v545_v44 = vmov 8.0  }
 0x10f   :  { %v131_v57 = vmul.f32 %v422_v53, %v130_v55  ;;  %vm335_vm2 = vcmask 1043459   ;;  %vm338_vm3 = vcmask 519168  }
 0x110   :  { %v152_v58 = vmul.f32 0.5, %v151_v56 }
 0x111   :  { %v132_v59 = vmul.f32 0.5, %v131_v57 }
 0x112   :  { %v153_v62 = vsub.f32 1.5, %v152_v58 }
 0x113   :  { %v424_v60 = vpop.eup %423  ;;  %v133_v0 = vsub.f32 1.5, %v132_v59 }
 0x114   :  { %v426_v61 = vpop.eup %425  ;;  %v160_v63 = vmul.f32 %v424_v60, %v128_v51  ;;  %v154_v4 = vmul.f32 %v420_v50, %v153_v62  ;;  %vm166_vm6 = vweird.f32 %v424_v60 }
 0x115   :  { %v140_v1 = vmul.f32 %v426_v61, %v126_v52  ;;  %v134_v6 = vmul.f32 %v422_v53, %v133_v0  ;;  %vm146_vm9 = vweird.f32 %v426_v61  ;;  %vm167_vm12 = vmor %vm165_vm11, %vm166_vm6 }
 0x116   :  { %v161_v2 = vmul.f32 %v424_v60, %v160_v63  ;;  %v158_v11 = vsel %vm157_vm7, %v420_v50, %v154_v4  ;;  %vm147_vm13 = vmor %vm145_vm8, %vm146_vm9 }
 0x117   :  { %v141_v3 = vmul.f32 %v426_v61, %v140_v1  ;;  %v138_v13 = vsel %vm137_vm10, %v422_v53, %v134_v6  ;;  %v171_v16 = vmul.f32 %v158_v11, %v590_v21 }
 0x118   :  { %v162_v5 = vmul.f32 0.5, %v161_v2  ;;  %v169_v18 = vmul.f32 %v138_v13, %v592_v22  ;;  %v415_v22 = vld [vmem:[%s633_s2] ss:$0 sm:$0xff]  ;;  %s546_s2 = smov [#allocation8]  }
 0x119   :  { %v142_v7 = vmul.f32 0.5, %v141_v3  ;;  %s345_s4 = sshll.u32 %s546_s2, 4  ;;  %s346_s4 = int_to_ptr.vmem [resolvable:$true] %s345_s4 }
 0x11a   :  { %v163_v8 = vsub.f32 1.5, %v162_v5 }
 0x11b   :  { %v143_v9 = vsub.f32 1.5, %v142_v7 }
 0x11c   :  { %v164_v10 = vmul.f32 %v424_v60, %v163_v8 }
 0x11d   :  { %v144_v12 = vmul.f32 %v426_v61, %v143_v9 }
 0x11e   :  { %v168_v14 = vsel %vm167_vm12, %v424_v60, %v164_v10 }
 0x11f   :  { %v148_v15 = vsel %vm147_vm13, %v426_v61, %v144_v12  ;;  %v172_v17 = vmul.f32 %v168_v14, %v600_v31 }
 0x120   :  { %v170_v19 = vmul.f32 %v148_v15, %v602_v32 }
 0x121   :  { %v174_v20 = vpack.c.bf16 %v172_v17, %v171_v16 }
 0x122   :  { %v173_v23 = vpack.c.bf16 %v170_v19, %v169_v18 }
 0x123   :  { %367 = vmatmul.msk.bf16.vlgmr.msra.gmra.mxu3 %vm77_vm0, %v174_v20 }
 0x124   :  { %366 = vmatmul.msk.bf16.vlgmr.msra.gmra.mxu0 %vm77_vm0, %v173_v23  ;;  %vm331_vm0 = vcmask 1041409  }
 0x1a1   :  { %v210_v21 = vpop.f32.mrf.mxu0 }
 0x1a2   :  { %v211_v29 = vadd.f32 %v415_v22, %v210_v21 }
 0x1a6   :  { %v215_v27 = vpop.f32.mrf.mxu3 }
 0x1a7   :  { %v216_v33 = vadd.f32 %v415_v22, %v215_v27 }
 0x1a9   :  { %v212_v28 = vpop.f32.mrf.mxu0 }
 0x1aa   :  { %v213_v30 = vadd.f32 %v415_v22, %v212_v28 }
 0x1ac   :  { %v220_v31 = vpack.c.bf16 %v213_v30, %v211_v29 }
 0x1ae   :  { %384 = vmatmul.msk.bf16.vlgmr.msra.gmra.mxu1 %vm258_vm14, %v220_v31  ;;  %v217_v32 = vpop.f32.mrf.mxu3 }
 0x1af   :  { %v218_v34 = vadd.f32 %v415_v22, %v217_v32 }
 0x1b1   :  { %v221_v35 = vpack.c.bf16 %v218_v34, %v216_v33 }
 0x1b3   :  { %385 = vmatmul.msk.bf16.vlgmr.msra.gmra.mxu2 %vm258_vm14, %v221_v35 }
 0x22b   :  { %v274_v37 = vpop.f32.mrf.mxu1 }
 0x22c   :  { %v275_v38 = vadd.f32 %v416_v36, %v274_v37 }
 0x22e   :  { %427 = vtanh.f32 %v275_v38 }
 0x233   :  { %v276_v39 = vpop.f32.mrf.mxu1 }
 0x234   :  { %v277_v40 = vadd.f32 %v416_v36, %v276_v39  ;;  %v428_v41 = vpop.eup %427 }
 0x235   :  { %v288_v45 = vsel %vm258_vm14, %v428_v41, 0.0 }
 0x236   :  { %429 = vtanh.f32 %v277_v40  ;;  %v279_v42 = vpop.f32.mrf.mxu2  ;;  %v289_v46 = vrot.slane %v288_v45, 4 }
 0x237   :  { %v280_v43 = vadd.f32 %v416_v36, %v279_v42  ;;  %431 = vrcp.f32 %v545_v44 }
 0x238   :  { %v290_v53 = vadd.f32 %v289_v46, %v288_v45 }
 0x239   :  { %433 = vtanh.f32 %v280_v43 }
 0x23a   :  { %v291_v60 = vrot.slane %v290_v53, 2 }
 0x23c   :  { %v430_v47 = vpop.eup %429  ;;  %v292_v2 = vadd.f32 %v291_v60, %v290_v53 }
 0x23d   :  { %v432_v48 = vpop.eup %431  ;;  %v295_v49 = vsel %vm258_vm14, %v430_v47, 0.0 }
 0x23e   :  { %v296_v50 = vrot.slane %v295_v49, 4  ;;  %v281_v51 = vpop.f32.mrf.mxu2  ;;  %v317_v57 = vmul.f32 8.0, %v432_v48  ;;  %v293_v9 = vrot.slane %v292_v2, 1  ;;  %vm321_vm15 = vweird.f32 %v432_v48 }
 0x23f   :  { %v434_v52 = vpop.eup %433  ;;  %v282_v54 = vadd.f32 %v416_v36, %v281_v51 }
 0x240   :  { %v297_v55 = vadd.f32 %v296_v50, %v295_v49  ;;  %v302_v56 = vsel %vm258_vm14, %v434_v52, 0.0  ;;  %v318_v62 = vsub.f32 1.0, %v317_v57  ;;  %v294_v15 = vadd.f32 %v293_v9, %v292_v2 }
 0x241   :  { %v303_v58 = vrot.slane %v302_v56, 4  ;;  %435 = vtanh.f32 %v282_v54 }
 0x242   :  { %v298_v59 = vrot.slane %v297_v55, 2  ;;  %v319_v5 = vmul.f32 %v432_v48, %v318_v62 }
 0x243   :  { %v304_v61 = vadd.f32 %v303_v58, %v302_v56 }
 0x244   :  { %v299_v63 = vadd.f32 %v298_v59, %v297_v55  ;;  %v320_v11 = vadd.f32 %v432_v48, %v319_v5 }
 0x245   :  { %v305_v0 = vrot.slane %v304_v61, 2 }
 0x246   :  { %v300_v6 = vrot.slane %v299_v63, 1  ;;  %v322_v17 = vsel %vm321_vm15, %v432_v48, %v320_v11 }
 0x247   :  { %v436_v1 = vpop.eup %435  ;;  %v306_v3 = vadd.f32 %v305_v0, %v304_v61  ;;  %v323_v24 = vmul.f32 %v322_v17, %v294_v15 }
 0x248   :  { %v309_v4 = vsel %vm258_vm14, %v436_v1, 0.0  ;;  %v301_v12 = vadd.f32 %v300_v6, %v299_v63 }
 0x249   :  { %v310_v7 = vrot.slane %v309_v4, 4  ;;  %v307_v8 = vrot.slane %v306_v3, 1 }
 0x24a   :  { %v324_v19 = vmul.f32 %v322_v17, %v301_v12 }
 0x24b   :  { %v311_v10 = vadd.f32 %v310_v7, %v309_v4  ;;  %v308_v14 = vadd.f32 %v307_v8, %v306_v3 }
 0x24c   :  { %v332_v26 = vsel %vm331_vm0, %v324_v19, %v323_v24 }
 0x24d   :  { %v312_v13 = vrot.slane %v311_v10, 2  ;;  %v325_v20 = vmul.f32 %v322_v17, %v308_v14 }
 0x24f   :  { %v313_v16 = vadd.f32 %v312_v13, %v311_v10  ;;  %v334_v21 = vsel %vm333_vm1, %v325_v20, %v332_v26 }
 0x251   :  { %v314_v18 = vrot.slane %v313_v16, 1 }
 0x253   :  { %v315_v23 = vadd.f32 %v314_v18, %v313_v16 }
 0x255   :  { %v326_v25 = vmul.f32 %v322_v17, %v315_v23 }
 0x257   :  { %v336_v22 = vsel %vm335_vm2, %v326_v25, %v334_v21 }
 0x258   :  { %339 = vst.msk [vmem:[#allocation8] sm:$0xf] %vm338_vm3, %v336_v22 }
 0x259   :  { %350 = dma.vmem_to_hbm [thread:$0]  %s346_s4, 64, %s348_s13, [#allocation4]  }
 0x25a   :  { %537 = dma.done.wait [#allocation4], 64  }
 0x25b   :  { %538 = vsyncadd [#allocation4], 4294967232 }
 0x25c   :  { %355 = vsyncpa [#allocation3], 1 }
 0x25d   :  { %356 = vsyncpa [#allocation6], 1 }
 0x25e   :  { %357 = vsyncpa [#allocation4], 1 }

// kernel: tpu_custom_call.1
= control target key start
LH: loop header
LB: loop body
LE: loop exit
PB: predicated region body
PF: predicated region fallthrough
CT: control target
= control target key end

     0   :  { %10 = vsyncpa [#allocation3], 0  ;;  %s631_s0 = inlined_call_operand.hbm [shape: bf16[32,32], index: 0, kind: input, shape index: {}]   ;;  %s632_s1 = inlined_call_operand.hbm [shape: bf16[32,64], index: 1, kind: input, shape index: {}]   ;;  %s633_s2 = inlined_call_operand.vmem [shape: f32[1,64], index: 2, kind: input, shape index: {}]   ;;  %s634_s3 = inlined_call_operand.hbm [shape: bf16[64,64], index: 3, kind: input, shape index: {}]   ;;  %s635_s4 = inlined_call_operand.vmem [shape: f32[1,64], index: 4, kind: input, shape index: {}]   ;;  %s636_s5 = inlined_call_operand.hbm [shape: f32[4,64], index: 5, kind: output, shape index: {}]  }
   0x1   :  { %11 = vsyncpa [#allocation6], 0 }
   0x2   :  { %12 = vsyncpa [#allocation4], 0  ;;  %s30_s20 = sshll.u32 %s632_s1, 4  ;;  %s539_s21 = smov [#allocation5]   ;;  %s31_s20 = int_to_ptr.hbm [resolvable:$true] %s30_s20 }
   0x3   :  { %s32_s22 = sshll.u32 %s539_s21, 4  ;;  %s17_s25 = sshll.u32 %s631_s0, 4  ;;  %s33_s22 = int_to_ptr.vmem [resolvable:$true] %s32_s22  ;;  %s18_s25 = int_to_ptr.hbm [resolvable:$true] %s17_s25 }
   0x4   :  { %s540_s26 = smov 64   ;;  %s541_s27 = smov 4  }
   0x5   :  { %38 = dma.hbm_to_vmem [thread:$0]  %s31_s20, 256, %s33_s22, [#allocation6], %s540_s26, %s540_s26, %s541_s27  }
   0x6   :  { %s542_s28 = smov [#allocation2]   ;;  %s45_s7 = sshll.u32 %s634_s3, 4  ;;  %s46_s7 = int_to_ptr.hbm [resolvable:$true] %s45_s7 }
   0x7   :  { %s19_s29 = sshll.u32 %s542_s28, 4  ;;  %s543_s1 = smov [#allocation7]   ;;  %s20_s29 = int_to_ptr.vmem [resolvable:$true] %s19_s29 }
   0x8   :  { %25 = dma.hbm_to_vmem [thread:$0]  %s18_s25, 256, %s20_s29, [#allocation3], %s540_s26, %s540_s26, %s541_s27  }
   0x9   :  { %s47_s8 = sshll.u32 %s543_s1, 4  ;;  %s48_s8 = int_to_ptr.vmem [resolvable:$true] %s47_s8 }
   0xa   :  { %53 = dma.hbm_to_vmem [thread:$0]  %s46_s7, 512, %s48_s8, [#allocation6], %s540_s26, %s540_s26, %s541_s27  }
   0xb   :  { %533 = dma.done.wait [#allocation3], 256  }
   0xc   :  { %534 = vsyncadd [#allocation3], 4294967040 }
   0xd   :  { %535 = dma.done.wait [#allocation6], 768  }
   0xe   :  { %536 = vsyncadd [#allocation6], 4294966528  ;;  %v400_v0 = vld [vmem:[#allocation2 + $0x8] sm:$0xff]   ;;  %vm77_vm0 = vcmask 261120   ;;  %v393_v1 = vld [vmem:[#allocation2] sm:$0xff]   ;;  %v544_v10 = vmov 32.0  }
   0xf   :  { %v398_v2 = vunpack.c.l.bf16 %v400_v0  ;;  %v394_v3 = vunpack.c.l.bf16 %v393_v1  ;;  %v399_v6 = vunpack.c.h.bf16 %v400_v0  ;;  %v395_v7 = vunpack.c.h.bf16 %v393_v1  ;;  %v387_v37 = vld [vmem:[#allocation5 + $0x8] sm:$0xff]  ;;  %v386_v38 = vld [vmem:[#allocation5] sm:$0xff]  ;;  %s347_s13 = sshll.u32 %s636_s5, 4  ;;  %s348_s13 = int_to_ptr.hbm [resolvable:$true] %s347_s13 }
  0x10   :  { %417 = vrcp.f32 %v544_v10  ;;  %207 = vmatpush.bf16.msra.mxu0 %v387_v37  ;;  %401 = vmatpush.bf16.msra.mxu3 %v387_v37  ;;  %v391_v45 = vld [vmem:[#allocation7 + $0x18] sm:$0xff]  ;;  %vm258_vm14 = vcmask 523264  }
  0x11   :  { %v84_v4 = vsel %vm77_vm0, %v398_v2, 0.0  ;;  %v78_v5 = vsel %vm77_vm0, %v394_v3, 0.0  ;;  %v87_v8 = vsel %vm77_vm0, %v399_v6, 0.0  ;;  %v81_v9 = vsel %vm77_vm0, %v395_v7, 0.0  ;;  %269 = vmatpush.bf16.msra.mxu1 %v391_v45  ;;  %403 = vmatpush.bf16.msra.mxu2 %v391_v45 }
  0x12   :  { %85 = vadd.xlane.f32.xlu0 %v84_v4  ;;  %79 = vadd.xlane.f32.xlu1 %v78_v5 }
  0x14   :  { %208 = vmatpush.bf16.msra.mxu0 %v386_v38  ;;  %402 = vmatpush.bf16.msra.mxu3 %v386_v38 }
  0x16   :  { %v418_v11 = vpop.eup %417 }
  0x17   :  { %v91_v12 = vmul.f32 32.0, %v418_v11  ;;  %vm95_vm1 = vweird.f32 %v418_v11 }
  0x19   :  { %v92_v13 = vsub.f32 1.0, %v91_v12 }
  0x1a   :  { %88 = vadd.xlane.f32.xlu0 %v87_v8  ;;  %82 = vadd.xlane.f32.xlu1 %v81_v9 }
  0x1b   :  { %v93_v14 = vmul.f32 %v418_v11, %v92_v13 }
  0x1d   :  { %v94_v15 = vadd.f32 %v418_v11, %v93_v14 }
  0x1f   :  { %v96_v16 = vsel %vm95_vm1, %v418_v11, %v94_v15  ;;  %vm333_vm1 = vcmask 1042434  }
  0x85   :  { %v86_v17 = vpop.xlane.xlu0 %85  ;;  %v80_v18 = vpop.xlane.xlu1 %79 }
  0x86   :  { %v99_v19 = vmul.f32 %v96_v16, %v86_v17  ;;  %v97_v20 = vmul.f32 %v96_v16, %v80_v18 }
  0x88   :  { %v590_v21 = vsub.f32 %v398_v2, %v99_v19  ;;  %v592_v22 = vsub.f32 %v394_v3, %v97_v20 }
  0x8a   :  { %v107_v23 = vmul.f32 %v590_v21, %v590_v21  ;;  %v105_v24 = vmul.f32 %v592_v22, %v592_v22 }
  0x8c   :  { %v115_v25 = vsel %vm77_vm0, %v107_v23, 0.0  ;;  %v109_v26 = vsel %vm77_vm0, %v105_v24, 0.0  ;;  %v390_v24 = vld [vmem:[#allocation7 + $0x10] sm:$0xff] }
  0x8d   :  { %116 = vadd.xlane.f32.xlu2 %v115_v25  ;;  %v89_v27 = vpop.xlane.xlu0 %88  ;;  %110 = vadd.xlane.f32.xlu0 %v109_v26  ;;  %v83_v28 = vpop.xlane.xlu1 %82  ;;  %v389_v25 = vld [vmem:[#allocation7 + $0x8] sm:$0xff]  ;;  %v388_v26 = vld [vmem:[#allocation7] sm:$0xff] }
  0x8e   :  { %v100_v29 = vmul.f32 %v96_v16, %v89_v27  ;;  %v98_v30 = vmul.f32 %v96_v16, %v83_v28  ;;  %270 = vmatpush.bf16.msra.mxu1 %v390_v24  ;;  %404 = vmatpush.bf16.msra.mxu2 %v390_v24 }
  0x90   :  { %v600_v31 = vsub.f32 %v399_v6, %v100_v29  ;;  %v602_v32 = vsub.f32 %v395_v7, %v98_v30 }
  0x92   :  { %v108_v33 = vmul.f32 %v600_v31, %v600_v31  ;;  %v106_v34 = vmul.f32 %v602_v32, %v602_v32  ;;  %271 = vmatpush.bf16.msra.mxu1 %v389_v25  ;;  %405 = vmatpush.bf16.msra.mxu2 %v389_v25 }
  0x94   :  { %v118_v35 = vsel %vm77_vm0, %v108_v33, 0.0  ;;  %v112_v36 = vsel %vm77_vm0, %v106_v34, 0.0 }
  0x95   :  { %119 = vadd.xlane.f32.xlu2 %v118_v35  ;;  %113 = vadd.xlane.f32.xlu1 %v112_v36  ;;  %v416_v36 = vld [vmem:[%s635_s4] ss:$0 sm:$0xff] }
  0x96   :  { %272 = vmatpush.bf16.msra.mxu1 %v388_v26  ;;  %406 = vmatpush.bf16.msra.mxu2 %v388_v26 }
 0x100   :  { %v117_v39 = vpop.xlane.xlu2 %116  ;;  %v111_v40 = vpop.xlane.xlu0 %110 }
 0x101   :  { %v123_v41 = vmul.f32 %v117_v39, %v96_v16  ;;  %v121_v42 = vmul.f32 %v111_v40, %v96_v16 }
 0x103   :  { %v127_v43 = vadd.f32 1e-12, %v123_v41  ;;  %v125_v44 = vadd.f32 1e-12, %v121_v42 }
 0x105   :  { %419 = vrsqrt.f32 %v127_v43  ;;  %vm135_vm3 = vweird.f32 %v125_v44  ;;  %vm155_vm5 = vweird.f32 %v127_v43 }
 0x106   :  { %421 = vrsqrt.f32 %v125_v44 }
 0x108   :  { %v120_v46 = vpop.xlane.xlu2 %119  ;;  %v114_v47 = vpop.xlane.xlu1 %113 }
 0x109   :  { %v124_v48 = vmul.f32 %v120_v46, %v96_v16  ;;  %v122_v49 = vmul.f32 %v114_v47, %v96_v16 }
 0x10b   :  { %v420_v50 = vpop.eup %419  ;;  %v128_v51 = vadd.f32 1e-12, %v124_v48  ;;  %v126_v52 = vadd.f32 1e-12, %v122_v49 }
 0x10c   :  { %v422_v53 = vpop.eup %421  ;;  %v150_v54 = vmul.f32 %v420_v50, %v127_v43  ;;  %vm156_vm2 = vweird.f32 %v420_v50 }
 0x10d   :  { %v130_v55 = vmul.f32 %v422_v53, %v125_v44  ;;  %423 = vrsqrt.f32 %v128_v51  ;;  %vm136_vm4 = vweird.f32 %v422_v53  ;;  %vm157_vm7 = vmor %vm155_vm5, %vm156_vm2  ;;  %vm145_vm8 = vweird.f32 %v126_v52 }
 0x10e   :  { %v151_v56 = vmul.f32 %v420_v50, %v150_v54  ;;  %425 = vrsqrt.f32 %v126_v52  ;;  %vm137_vm10 = vmor %vm135_vm3, %vm136_vm4  ;;  %vm165_vm11 = vweird.f32 %v128_v51  ;;  %v545_v44 = vmov 8.0  }
 0x10f   :  { %v131_v57 = vmul.f32 %v422_v53, %v130_v55  ;;  %vm335_vm2 = vcmask 1043459   ;;  %vm338_vm3 = vcmask 519168  }
 0x110   :  { %v152_v58 = vmul.f32 0.5, %v151_v56 }
 0x111   :  { %v132_v59 = vmul.f32 0.5, %v131_v57 }
 0x112   :  { %v153_v62 = vsub.f32 1.5, %v152_v58 }
 0x113   :  { %v424_v60 = vpop.eup %423  ;;  %v133_v0 = vsub.f32 1.5, %v132_v59 }
 0x114   :  { %v426_v61 = vpop.eup %425  ;;  %v160_v63 = vmul.f32 %v424_v60, %v128_v51  ;;  %v154_v4 = vmul.f32 %v420_v50, %v153_v62  ;;  %vm166_vm6 = vweird.f32 %v424_v60 }
 0x115   :  { %v140_v1 = vmul.f32 %v426_v61, %v126_v52  ;;  %v134_v6 = vmul.f32 %v422_v53, %v133_v0  ;;  %vm146_vm9 = vweird.f32 %v426_v61  ;;  %vm167_vm12 = vmor %vm165_vm11, %vm166_vm6 }
 0x116   :  { %v161_v2 = vmul.f32 %v424_v60, %v160_v63  ;;  %v158_v11 = vsel %vm157_vm7, %v420_v50, %v154_v4  ;;  %vm147_vm13 = vmor %vm145_vm8, %vm146_vm9 }
 0x117   :  { %v141_v3 = vmul.f32 %v426_v61, %v140_v1  ;;  %v138_v13 = vsel %vm137_vm10, %v422_v53, %v134_v6  ;;  %v171_v16 = vmul.f32 %v158_v11, %v590_v21 }
 0x118   :  { %v162_v5 = vmul.f32 0.5, %v161_v2  ;;  %v169_v18 = vmul.f32 %v138_v13, %v592_v22  ;;  %v415_v22 = vld [vmem:[%s633_s2] ss:$0 sm:$0xff]  ;;  %s546_s2 = smov [#allocation8]  }
 0x119   :  { %v142_v7 = vmul.f32 0.5, %v141_v3  ;;  %s345_s4 = sshll.u32 %s546_s2, 4  ;;  %s346_s4 = int_to_ptr.vmem [resolvable:$true] %s345_s4 }
 0x11a   :  { %v163_v8 = vsub.f32 1.5, %v162_v5 }
 0x11b   :  { %v143_v9 = vsub.f32 1.5, %v142_v7 }
 0x11c   :  { %v164_v10 = vmul.f32 %v424_v60, %v163_v8 }
 0x11d   :  { %v144_v12 = vmul.f32 %v426_v61, %v143_v9 }
 0x11e   :  { %v168_v14 = vsel %vm167_vm12, %v424_v60, %v164_v10 }
 0x11f   :  { %v148_v15 = vsel %vm147_vm13, %v426_v61, %v144_v12  ;;  %v172_v17 = vmul.f32 %v168_v14, %v600_v31 }
 0x120   :  { %v170_v19 = vmul.f32 %v148_v15, %v602_v32 }
 0x121   :  { %v174_v20 = vpack.c.bf16 %v172_v17, %v171_v16 }
 0x122   :  { %v173_v23 = vpack.c.bf16 %v170_v19, %v169_v18 }
 0x123   :  { %367 = vmatmul.msk.bf16.vlgmr.msra.gmra.mxu3 %vm77_vm0, %v174_v20 }
 0x124   :  { %366 = vmatmul.msk.bf16.vlgmr.msra.gmra.mxu0 %vm77_vm0, %v173_v23  ;;  %vm331_vm0 = vcmask 1041409  }
 0x1a1   :  { %v210_v21 = vpop.f32.mrf.mxu0 }
 0x1a2   :  { %v211_v29 = vadd.f32 %v415_v22, %v210_v21 }
 0x1a6   :  { %v215_v27 = vpop.f32.mrf.mxu3 }
 0x1a7   :  { %v216_v33 = vadd.f32 %v415_v22, %v215_v27 }
 0x1a9   :  { %v212_v28 = vpop.f32.mrf.mxu0 }
 0x1aa   :  { %v213_v30 = vadd.f32 %v415_v22, %v212_v28 }
 0x1ac   :  { %v220_v31 = vpack.c.bf16 %v213_v30, %v211_v29 }
 0x1ae   :  { %384 = vmatmul.msk.bf16.vlgmr.msra.gmra.mxu1 %vm258_vm14, %v220_v31  ;;  %v217_v32 = vpop.f32.mrf.mxu3 }
 0x1af   :  { %v218_v34 = vadd.f32 %v415_v22, %v217_v32 }
 0x1b1   :  { %v221_v35 = vpack.c.bf16 %v218_v34, %v216_v33 }
 0x1b3   :  { %385 = vmatmul.msk.bf16.vlgmr.msra.gmra.mxu2 %vm258_vm14, %v221_v35 }
 0x22b   :  { %v274_v37 = vpop.f32.mrf.mxu1 }
 0x22c   :  { %v275_v38 = vadd.f32 %v416_v36, %v274_v37 }
 0x22e   :  { %427 = vtanh.f32 %v275_v38 }
 0x233   :  { %v276_v39 = vpop.f32.mrf.mxu1 }
 0x234   :  { %v277_v40 = vadd.f32 %v416_v36, %v276_v39  ;;  %v428_v41 = vpop.eup %427 }
 0x235   :  { %v288_v45 = vsel %vm258_vm14, %v428_v41, 0.0 }
 0x236   :  { %429 = vtanh.f32 %v277_v40  ;;  %v279_v42 = vpop.f32.mrf.mxu2  ;;  %v289_v46 = vrot.slane %v288_v45, 4 }
 0x237   :  { %v280_v43 = vadd.f32 %v416_v36, %v279_v42  ;;  %431 = vrcp.f32 %v545_v44 }
 0x238   :  { %v290_v53 = vadd.f32 %v289_v46, %v288_v45 }
 0x239   :  { %433 = vtanh.f32 %v280_v43 }
 0x23a   :  { %v291_v60 = vrot.slane %v290_v53, 2 }
 0x23c   :  { %v430_v47 = vpop.eup %429  ;;  %v292_v2 = vadd.f32 %v291_v60, %v290_v53 }
 0x23d   :  { %v432_v48 = vpop.eup %431  ;;  %v295_v49 = vsel %vm258_vm14, %v430_v47, 0.0 }
 0x23e   :  { %v296_v50 = vrot.slane %v295_v49, 4  ;;  %v281_v51 = vpop.f32.mrf.mxu2  ;;  %v317_v57 = vmul.f32 8.0, %v432_v48  ;;  %v293_v9 = vrot.slane %v292_v2, 1  ;;  %vm321_vm15 = vweird.f32 %v432_v48 }
 0x23f   :  { %v434_v52 = vpop.eup %433  ;;  %v282_v54 = vadd.f32 %v416_v36, %v281_v51 }
 0x240   :  { %v297_v55 = vadd.f32 %v296_v50, %v295_v49  ;;  %v302_v56 = vsel %vm258_vm14, %v434_v52, 0.0  ;;  %v318_v62 = vsub.f32 1.0, %v317_v57  ;;  %v294_v15 = vadd.f32 %v293_v9, %v292_v2 }
 0x241   :  { %v303_v58 = vrot.slane %v302_v56, 4  ;;  %435 = vtanh.f32 %v282_v54 }
 0x242   :  { %v298_v59 = vrot.slane %v297_v55, 2  ;;  %v319_v5 = vmul.f32 %v432_v48, %v318_v62 }
 0x243   :  { %v304_v61 = vadd.f32 %v303_v58, %v302_v56 }
 0x244   :  { %v299_v63 = vadd.f32 %v298_v59, %v297_v55  ;;  %v320_v11 = vadd.f32 %v432_v48, %v319_v5 }
 0x245   :  { %v305_v0 = vrot.slane %v304_v61, 2 }
 0x246   :  { %v300_v6 = vrot.slane %v299_v63, 1  ;;  %v322_v17 = vsel %vm321_vm15, %v432_v48, %v320_v11 }
 0x247   :  { %v436_v1 = vpop.eup %435  ;;  %v306_v3 = vadd.f32 %v305_v0, %v304_v61  ;;  %v323_v24 = vmul.f32 %v322_v17, %v294_v15 }
 0x248   :  { %v309_v4 = vsel %vm258_vm14, %v436_v1, 0.0  ;;  %v301_v12 = vadd.f32 %v300_v6, %v299_v63 }
 0x249   :  { %v310_v7 = vrot.slane %v309_v4, 4  ;;  %v307_v8 = vrot.slane %v306_v3, 1 }
 0x24a   :  { %v324_v19 = vmul.f32 %v322_v17, %v301_v12 }
 0x24b   :  { %v311_v10 = vadd.f32 %v310_v7, %v309_v4  ;;  %v308_v14 = vadd.f32 %v307_v8, %v306_v3 }
 0x24c   :  { %v332_v26 = vsel %vm331_vm0, %v324_v19, %v323_v24 }
 0x24d   :  { %v312_v13 = vrot.slane %v311_v10, 2  ;;  %v325_v20 = vmul.f32 %v322_v17, %v308_v14 }
 0x24f   :  { %v313_v16 = vadd.f32 %v312_v13, %v311_v10  ;;  %v334_v21 = vsel %vm333_vm1, %v325_v20, %v332_v26 }
 0x251   :  { %v314_v18 = vrot.slane %v313_v16, 1 }
 0x253   :  { %v315_v23 = vadd.f32 %v314_v18, %v313_v16 }
 0x255   :  { %v326_v25 = vmul.f32 %v322_v17, %v315_v23 }
 0x257   :  { %v336_v22 = vsel %vm335_vm2, %v326_v25, %v334_v21 }
 0x258   :  { %339 = vst.msk [vmem:[#allocation8] sm:$0xf] %vm338_vm3, %v336_v22 }
 0x259   :  { %350 = dma.vmem_to_hbm [thread:$0]  %s346_s4, 64, %s348_s13, [#allocation4]  }
 0x25a   :  { %537 = dma.done.wait [#allocation4], 64  }
 0x25b   :  { %538 = vsyncadd [#allocation4], 4294967232 }
 0x25c   :  { %355 = vsyncpa [#allocation3], 1 }
 0x25d   :  { %356 = vsyncpa [#allocation6], 1 }
 0x25e   :  { %357 = vsyncpa [#allocation4], 1 }

</bundles_post_ra>
